<compile_context>
chip_gen: v7x
topology: tpu7x:2x2x1
jax: 0.10.0
libtpu: 0.0.40
codegen_flags: <defaults>
</compile_context>

<pallas_src>
import functools

import jax
import jax.numpy as jnp
from jax import lax
from jax.experimental import pallas as pl
from jax.experimental.pallas import tpu as pltpu

_LANE = 128
# Columns of the packed per-row stats slab.
_STATS_CONF = 0   # confidence = max(prob) = 1/sum(exp(logits - max))
_STATS_PRED = 1   # argmax(logits), stored as f32 (exact for any realistic L)
_STATS_LOSS = 2   # per-row weighted cross-entropy loss


def _classifier_kernel(cls_ref, w1_ref, b1_ref, w2_ref, b2_ref,
                       labels_ref, weights_ref,
                       logits_ref, prob_ref, stats_ref):
    # --- one_more_layer: Linear(H, H)
    h = (jnp.dot(cls_ref[...], w1_ref[...],
                 preferred_element_type=jnp.float32) + b1_ref[...])

    # --- classifier: Linear(H, Lp)   (Lp = num_labels padded to 128 lanes,
    #     padded bias columns are -1e30 so they never affect max/softmax/argmax)
    logits = (jnp.dot(h, w2_ref[...],
                      preferred_element_type=jnp.float32) + b2_ref[...])
    logits_ref[...] = logits

    # --- numerically stable softmax (padded lanes: exp(-1e30 - m) == 0 exactly)
    m = jnp.max(logits, axis=-1, keepdims=True)          # (TB, 1)
    e = jnp.exp(logits - m)                               # (TB, Lp)
    s = jnp.sum(e, axis=-1, keepdims=True)                # (TB, 1)
    inv_s = 1.0 / s                                       # one per-row reciprocal
    prob_ref[...] = e * inv_s                             # multiply, not divide

    # --- per-sample cross entropy: logsumexp(logits) - logits[label]
    lse = m + jnp.log(s)                                  # (TB, 1)
    lane = lax.broadcasted_iota(jnp.int32, logits.shape, 1)
    onehot = (lane == labels_ref[...]).astype(jnp.float32)   # labels: (TB, 1)
    true_logit = jnp.sum(logits * onehot, axis=-1, keepdims=True)
    wloss = (lse - true_logit) * weights_ref[...]         # (TB, 1)

    # --- confidence = max(prob) = exp(0) / s = 1/s  (exact, no cross-lane max)
    conf = inv_s
    pred = jnp.argmax(logits, axis=-1, keepdims=True).astype(jnp.float32)

    # --- pack conf / pred / per-row weighted loss into one lane-dense slab
    stats_lane = lax.broadcasted_iota(jnp.int32, stats_ref.shape, 1)
    stats_ref[...] = (jnp.where(stats_lane == _STATS_CONF, conf, 0.0)
                      + jnp.where(stats_lane == _STATS_PRED, pred, 0.0)
                      + jnp.where(stats_lane == _STATS_LOSS, wloss, 0.0))


@functools.partial(jax.jit, static_argnames=("block_b",))
def multi_class_classifier_forward(hidden, w1, b1, w2, b2, labels, weights,
                                   *, block_b=128):
    B, S, H = hidden.shape
    L = w2.shape[1]

    # CLS pooling outside the kernel: only B*H elements of the encoder output
    # ever reach HBM->VMEM DMA (instead of the full [B, S, H]).
    cls = hidden[:, 0, :].astype(jnp.float32)

    # Pad num_labels up to a full lane tile for lane-dense matmul/stores.
    Lp = max(_LANE, pl.cdiv(L, _LANE) * _LANE)
    w2p = jnp.pad(w2.astype(jnp.float32), ((0, 0), (0, Lp - L)))
    b2p = jnp.pad(b2.astype(jnp.float32), ((0, 0), (0, Lp - L)),
                  constant_values=-1e30)

    TB = min(block_b, B)
    assert B % TB == 0, "batch must be divisible by the batch tile size"
    grid = (B // TB,)

    grid_spec = pltpu.PrefetchScalarGridSpec(
        num_scalar_prefetch=0,
        grid=grid,
        in_specs=[
            pl.BlockSpec((TB, H), lambda i: (i, 0)),      # CLS hidden slice
            pl.BlockSpec((H, H), lambda i: (0, 0)),       # w1 (fetched once)
            pl.BlockSpec((1, H), lambda i: (0, 0)),       # b1
            pl.BlockSpec((H, Lp), lambda i: (0, 0)),      # w2 (padded)
            pl.BlockSpec((1, Lp), lambda i: (0, 0)),      # b2 (padded)
            pl.BlockSpec((TB, 1), lambda i: (i, 0)),      # labels
            pl.BlockSpec((TB, 1), lambda i: (i, 0)),      # weights
        ],
        out_specs=[
            pl.BlockSpec((TB, Lp), lambda i: (i, 0)),     # logits (padded lanes)
            pl.BlockSpec((TB, Lp), lambda i: (i, 0)),     # prob   (padded lanes)
            pl.BlockSpec((TB, _LANE), lambda i: (i, 0)),  # packed stats slab
        ],
    )

    out_shapes = (
        jax.ShapeDtypeStruct((B, Lp), jnp.float32),
        jax.ShapeDtypeStruct((B, Lp), jnp.float32),
        jax.ShapeDtypeStruct((B, _LANE), jnp.float32),
    )

    logits_p, prob_p, stats = pl.pallas_call(
        _classifier_kernel,
        out_shape=out_shapes,
        grid_spec=grid_spec,
        compiler_params=pltpu.CompilerParams(
            # Batch tiles are independent -> megacore-shard across v7x's 2 TCs.
            dimension_semantics=("parallel",),
            # Explicit VMEM budget sized for v7x (64 MiB physical / 32 MiB
            # default scoped); per-step working set here is far below this.
            vmem_limit_bytes=32 * 1024 * 1024,
        ),
    )(cls, w1, b1, w2p, b2p, labels, weights)

    # Finish the weighted mean loss in the wrapper (mean over batch, matching
    # `(losses * weights).mean()` in the module).
    loss = jnp.mean(stats[:, _STATS_LOSS])
    return {
        "loss": loss,
        "logits": logits_p[:, :L],
        "prob": prob_p[:, :L],
        "pred": stats[:, _STATS_PRED].astype(jnp.int32),
        "confidence": stats[:, _STATS_CONF],
    }


def _reference(hidden, w1, b1, w2, b2, labels, weights):
    h = hidden[:, 0, :].astype(jnp.float32) @ w1 + b1
    logits = h @ w2 + b2
    lse = jax.scipy.special.logsumexp(logits, axis=-1)
    losses = lse - jnp.take_along_axis(logits, labels, axis=-1)[:, 0]
    loss = jnp.mean(losses * weights[:, 0])
    prob = jax.nn.softmax(logits, axis=-1)
    return loss, logits, prob, jnp.argmax(logits, -1), jnp.max(prob, -1)


if __name__ == "__main__":
    # Small synthetic shapes consistent with the module's forward.
    # batch, seq len, bert_output_dim, num_labels; batch tile = 8 -> grid (2,)
    B, S, H, L = 16, 8, 128, 16

    key = jax.random.PRNGKey(0)
    k_hid, k_w1, k_b1, k_w2, k_b2, k_lab = jax.random.split(key, 6)

    # Synthetic encoder output (stand-in for self.utterance_encoder(...)[0]).
    # TODO(synk): the pretrained BERT/GPT2 encoder itself is not reproduced.
    hidden = jax.random.normal(k_hid, (B, S, H), dtype=jnp.float32)

    # Deterministic Linear init (PyTorch-style uniform(-1/sqrt(fan_in), ...)).
    bound1 = 1.0 / (H ** 0.5)
    w1 = jax.random.uniform(k_w1, (H, H), jnp.float32, -bound1, bound1)
    b1 = jax.random.uniform(k_b1, (1, H), jnp.float32, -bound1, bound1)
    w2 = jax.random.uniform(k_w2, (H, L), jnp.float32, -bound1, bound1)
    b2 = jax.random.uniform(k_b2, (1, L), jnp.float32, -bound1, bound1)

    labels = jax.random.randint(k_lab, (B, 1), 0, L, dtype=jnp.int32)
    weights = jnp.ones((B, 1), dtype=jnp.float32)   # default weights.append(1)

    outputs = multi_class_classifier_forward(hidden, w1, b1, w2, b2,
                                             labels, weights, block_b=8)
    jax.block_until_ready(outputs)

    # Sanity check against a pure-JAX reference.
    ref_loss, ref_logits, ref_prob, ref_pred, ref_conf = _reference(
        hidden, w1, b1, w2, b2, labels, weights)
    assert jnp.allclose(outputs["logits"], ref_logits, rtol=1e-5, atol=1e-5)
    assert jnp.allclose(outputs["prob"], ref_prob, rtol=1e-5, atol=1e-5)
    assert jnp.allclose(outputs["loss"], ref_loss, rtol=1e-5, atol=1e-5)
    assert jnp.array_equal(outputs["pred"], ref_pred)
    assert jnp.allclose(outputs["confidence"], ref_conf, rtol=1e-5, atol=1e-5)

    print("KERNEL_OK")
</pallas_src>

<mosaic_0001>
module attributes {stable_mosaic.version = 11 : i64} {
  func.func @_classifier_kernel(%arg0: i32, %arg1: memref<8x128xf32, #tpu.memory_space<vmem>>, %arg2: memref<128x128xf32, #tpu.memory_space<vmem>>, %arg3: memref<1x128xf32, #tpu.memory_space<vmem>>, %arg4: memref<128x128xf32, #tpu.memory_space<vmem>>, %arg5: memref<1x128xf32, #tpu.memory_space<vmem>>, %arg6: memref<8x1xi32, #tpu.memory_space<vmem>>, %arg7: memref<8x1xf32, #tpu.memory_space<vmem>>, %arg8: memref<8x128xf32, #tpu.memory_space<vmem>>, %arg9: memref<8x128xf32, #tpu.memory_space<vmem>>, %arg10: memref<8x128xf32, #tpu.memory_space<vmem>>) attributes {dimension_semantics = [#tpu.dimension_semantics<parallel>], iteration_bounds = array<i64: 2>, scalar_prefetch = 0 : i64, scratch_operands = 0 : i64, tpu.core_type = #tpu.core_type<tc>, window_params = [{transform_indices = @transform_0, window_bounds = array<i64: 8, 128>}, {pipeline_mode = #tpu.pipeline_mode<synchronous>, transform_indices = @transform_1, window_bounds = array<i64: 128, 128>}, {pipeline_mode = #tpu.pipeline_mode<synchronous>, transform_indices = @transform_2, window_bounds = array<i64: 1, 128>}, {pipeline_mode = #tpu.pipeline_mode<synchronous>, transform_indices = @transform_3, window_bounds = array<i64: 128, 128>}, {pipeline_mode = #tpu.pipeline_mode<synchronous>, transform_indices = @transform_4, window_bounds = array<i64: 1, 128>}, {transform_indices = @transform_5, window_bounds = array<i64: 8, 1>}, {transform_indices = @transform_6, window_bounds = array<i64: 8, 1>}, {transform_indices = @transform_7, window_bounds = array<i64: 8, 128>}, {transform_indices = @transform_8, window_bounds = array<i64: 8, 128>}, {transform_indices = @transform_9, window_bounds = array<i64: 8, 128>}]} {
    %c0 = arith.constant 0 : index
    %c0_0 = arith.constant 0 : index
    %0 = vector.load %arg1[%c0, %c0_0] : memref<8x128xf32, #tpu.memory_space<vmem>>, vector<8x128xf32>
    %c0_1 = arith.constant 0 : index
    %c0_2 = arith.constant 0 : index
    %1 = vector.load %arg2[%c0_1, %c0_2] : memref<128x128xf32, #tpu.memory_space<vmem>>, vector<128x128xf32>
    %cst = arith.constant dense<0.000000e+00> : vector<8x128xf32>
    %2 = tpu.matmul %0, %1, %cst {dimension_numbers = #tpu.dot_dimension_numbers<[1], [0], [0], [1], [0, 0, 1, 1], [], []>} : vector<8x128xf32>, vector<128x128xf32>, vector<8x128xf32> -> vector<8x128xf32>
    %c0_3 = arith.constant 0 : index
    %c0_4 = arith.constant 0 : index
    %3 = vector.load %arg3[%c0_3, %c0_4] : memref<1x128xf32, #tpu.memory_space<vmem>>, vector<1x128xf32>
    %4 = vector.broadcast %3 : vector<1x128xf32> to vector<8x128xf32>
    %5 = arith.addf %2, %4 : vector<8x128xf32>
    %c0_5 = arith.constant 0 : index
    %c0_6 = arith.constant 0 : index
    %6 = vector.load %arg4[%c0_5, %c0_6] : memref<128x128xf32, #tpu.memory_space<vmem>>, vector<128x128xf32>
    %cst_7 = arith.constant dense<0.000000e+00> : vector<8x128xf32>
    %7 = tpu.matmul %5, %6, %cst_7 {dimension_numbers = #tpu.dot_dimension_numbers<[1], [0], [0], [1], [0, 0, 1, 1], [], []>} : vector<8x128xf32>, vector<128x128xf32>, vector<8x128xf32> -> vector<8x128xf32>
    %c0_8 = arith.constant 0 : index
    %c0_9 = arith.constant 0 : index
    %8 = vector.load %arg5[%c0_8, %c0_9] : memref<1x128xf32, #tpu.memory_space<vmem>>, vector<1x128xf32>
    %9 = vector.broadcast %8 : vector<1x128xf32> to vector<8x128xf32>
    %10 = arith.addf %7, %9 : vector<8x128xf32>
    %c0_10 = arith.constant 0 : index
    %c0_11 = arith.constant 0 : index
    %11 = vector.load %arg8[%c0_10, %c0_11] : memref<8x128xf32, #tpu.memory_space<vmem>>, vector<8x128xf32>
    tpu.vector_store %arg8[%c0_10, %c0_11], %10 {strides = array<i32>} : memref<8x128xf32, #tpu.memory_space<vmem>>, vector<8x128xf32>,
    %cst_12 = arith.constant dense<0xFF800000> : vector<8xf32>
    %12 = vector.multi_reduction <maximumf>, %10, %cst_12 [1] : vector<8x128xf32> to vector<8xf32>
    %13 = vector.shape_cast %12 : vector<8xf32> to vector<8x1xf32>
    %14 = vector.broadcast %13 : vector<8x1xf32> to vector<8x128xf32>
    %15 = arith.subf %10, %14 : vector<8x128xf32>
    %16 = math.exp %15 : vector<8x128xf32>
    %cst_13 = arith.constant dense<0.000000e+00> : vector<8xf32>
    %17 = vector.multi_reduction <add>, %16, %cst_13 [1] : vector<8x128xf32> to vector<8xf32>
    %18 = vector.shape_cast %17 : vector<8xf32> to vector<8x1xf32>
    %cst_14 = arith.constant 1.000000e+00 : f32
    %19 = vector.broadcast %cst_14 : f32 to vector<8x1xf32>
    %20 = arith.divf %19, %18 : vector<8x1xf32>
    %21 = vector.broadcast %20 : vector<8x1xf32> to vector<8x128xf32>
    %22 = arith.mulf %16, %21 : vector<8x128xf32>
    %c0_15 = arith.constant 0 : index
    %c0_16 = arith.constant 0 : index
    %23 = vector.load %arg9[%c0_15, %c0_16] : memref<8x128xf32, #tpu.memory_space<vmem>>, vector<8x128xf32>
    tpu.vector_store %arg9[%c0_15, %c0_16], %22 {strides = array<i32>} : memref<8x128xf32, #tpu.memory_space<vmem>>, vector<8x128xf32>,
    %24 = math.log %18 : vector<8x1xf32>
    %25 = arith.addf %13, %24 : vector<8x1xf32>
    %26 = tpu.iota {dimensions = array<i32: 1>} : vector<8x128xi32>
    %c0_17 = arith.constant 0 : index
    %c0_18 = arith.constant 0 : index
    %27 = vector.load %arg6[%c0_17, %c0_18] : memref<8x1xi32, #tpu.memory_space<vmem>>, vector<8x1xi32>
    %28 = vector.broadcast %27 : vector<8x1xi32> to vector<8x128xi32>
    %29 = arith.cmpi eq, %26, %28 : vector<8x128xi32>
    %30 = arith.extui %29 : vector<8x128xi1> to vector<8x128xi32>
    %31 = arith.sitofp %30 : vector<8x128xi32> to vector<8x128xf32>
    %32 = arith.mulf %10, %31 : vector<8x128xf32>
    %cst_19 = arith.constant dense<0.000000e+00> : vector<8xf32>
    %33 = vector.multi_reduction <add>, %32, %cst_19 [1] : vector<8x128xf32> to vector<8xf32>
    %34 = vector.shape_cast %33 : vector<8xf32> to vector<8x1xf32>
    %35 = arith.subf %25, %34 : vector<8x1xf32>
    %c0_20 = arith.constant 0 : index
    %c0_21 = arith.constant 0 : index
    %36 = vector.load %arg7[%c0_20, %c0_21] : memref<8x1xf32, #tpu.memory_space<vmem>>, vector<8x1xf32>
    %37 = arith.mulf %35, %36 : vector<8x1xf32>
    %38 = tpu.reduce_index %10 {axis = 1 : i32, kind = #tpu.reduction_kind<arg_max>} : vector<8x128xf32> -> vector<8xi32>
    %39 = vector.shape_cast %38 : vector<8xi32> to vector<8x1xi32>
    %40 = arith.sitofp %39 : vector<8x1xi32> to vector<8x1xf32>
    %41 = tpu.iota {dimensions = array<i32: 1>} : vector<8x128xi32>
    %c0_i32 = arith.constant 0 : i32
    %42 = vector.broadcast %c0_i32 : i32 to vector<8x128xi32>
    %43 = arith.cmpi eq, %41, %42 : vector<8x128xi32>
    %cst_22 = arith.constant 0.000000e+00 : f32
    %44 = vector.shape_cast %20 : vector<8x1xf32> to vector<8x1xf32>
    %45 = vector.broadcast %44 : vector<8x1xf32> to vector<8x128xf32>
    %46 = vector.broadcast %cst_22 : f32 to vector<8x128xf32>
    %47 = arith.select %43, %45, %46 : vector<8x128xi1>, vector<8x128xf32>
    %c1_i32 = arith.constant 1 : i32
    %48 = vector.broadcast %c1_i32 : i32 to vector<8x128xi32>
    %49 = arith.cmpi eq, %41, %48 : vector<8x128xi32>
    %cst_23 = arith.constant 0.000000e+00 : f32
    %50 = vector.shape_cast %40 : vector<8x1xf32> to vector<8x1xf32>
    %51 = vector.broadcast %50 : vector<8x1xf32> to vector<8x128xf32>
    %52 = vector.broadcast %cst_23 : f32 to vector<8x128xf32>
    %53 = arith.select %49, %51, %52 : vector<8x128xi1>, vector<8x128xf32>
    %54 = arith.addf %47, %53 : vector<8x128xf32>
    %c2_i32 = arith.constant 2 : i32
    %55 = vector.broadcast %c2_i32 : i32 to vector<8x128xi32>
    %56 = arith.cmpi eq, %41, %55 : vector<8x128xi32>
    %cst_24 = arith.constant 0.000000e+00 : f32
    %57 = vector.shape_cast %37 : vector<8x1xf32> to vector<8x1xf32>
    %58 = vector.broadcast %57 : vector<8x1xf32> to vector<8x128xf32>
    %59 = vector.broadcast %cst_24 : f32 to vector<8x128xf32>
    %60 = arith.select %56, %58, %59 : vector<8x128xi1>, vector<8x128xf32>
    %61 = arith.addf %54, %60 : vector<8x128xf32>
    %c0_25 = arith.constant 0 : index
    %c0_26 = arith.constant 0 : index
    %62 = vector.load %arg10[%c0_25, %c0_26] : memref<8x128xf32, #tpu.memory_space<vmem>>, vector<8x128xf32>
    tpu.vector_store %arg10[%c0_25, %c0_26], %61 {strides = array<i32>} : memref<8x128xf32, #tpu.memory_space<vmem>>, vector<8x128xf32>,
    return
  }
  func.func @transform_0(%arg0: i32) -> (i32, i32) {
    %c0_i32 = arith.constant 0 : i32
    %c0_i32_0 = arith.constant 0 : i32
    return %arg0, %c0_i32 : i32, i32
  }
  func.func @transform_1(%arg0: i32) -> (i32, i32) {
    %c0_i32 = arith.constant 0 : i32
    %c0_i32_0 = arith.constant 0 : i32
    %c0_i32_1 = arith.constant 0 : i32
    return %c0_i32, %c0_i32_0 : i32, i32
  }
  func.func @transform_2(%arg0: i32) -> (i32, i32) {
    %c0_i32 = arith.constant 0 : i32
    %c0_i32_0 = arith.constant 0 : i32
    %c0_i32_1 = arith.constant 0 : i32
    return %c0_i32, %c0_i32_0 : i32, i32
  }
  func.func @transform_3(%arg0: i32) -> (i32, i32) {
    %c0_i32 = arith.constant 0 : i32
    %c0_i32_0 = arith.constant 0 : i32
    %c0_i32_1 = arith.constant 0 : i32
    return %c0_i32, %c0_i32_0 : i32, i32
  }
  func.func @transform_4(%arg0: i32) -> (i32, i32) {
    %c0_i32 = arith.constant 0 : i32
    %c0_i32_0 = arith.constant 0 : i32
    %c0_i32_1 = arith.constant 0 : i32
    return %c0_i32, %c0_i32_0 : i32, i32
  }
  func.func @transform_5(%arg0: i32) -> (i32, i32) {
    %c0_i32 = arith.constant 0 : i32
    %c0_i32_0 = arith.constant 0 : i32
    return %arg0, %c0_i32 : i32, i32
  }
  func.func @transform_6(%arg0: i32) -> (i32, i32) {
    %c0_i32 = arith.constant 0 : i32
    %c0_i32_0 = arith.constant 0 : i32
    return %arg0, %c0_i32 : i32, i32
  }
  func.func @transform_7(%arg0: i32) -> (i32, i32) {
    %c0_i32 = arith.constant 0 : i32
    %c0_i32_0 = arith.constant 0 : i32
    return %arg0, %c0_i32 : i32, i32
  }
  func.func @transform_8(%arg0: i32) -> (i32, i32) {
    %c0_i32 = arith.constant 0 : i32
    %c0_i32_0 = arith.constant 0 : i32
    return %arg0, %c0_i32 : i32, i32
  }
  func.func @transform_9(%arg0: i32) -> (i32, i32) {
    %c0_i32 = arith.constant 0 : i32
    %c0_i32_0 = arith.constant 0 : i32
    return %arg0, %c0_i32 : i32, i32
  }
}

</mosaic_0001>

<bundles_post_ra>
// kernel: multi_class_classifier_forward.1
= control target key start
LH: loop header
LB: loop body
LE: loop exit
PB: predicated region body
PF: predicated region fallthrough
CT: control target
= control target key end

     0   :  { %s1456_s0 = inlined_call_operand.vmem [shape: f32[16,128], index: 0, kind: input, shape index: {}]   ;;  %s1457_s1 = inlined_call_operand.vmem [shape: f32[128,128], index: 1, kind: input, shape index: {}]   ;;  %s1458_s2 = inlined_call_operand.vmem [shape: f32[1,128], index: 2, kind: input, shape index: {}]   ;;  %s1459_s3 = inlined_call_operand.vmem [shape: f32[128,128], index: 3, kind: input, shape index: {}]   ;;  %s1460_s4 = inlined_call_operand.vmem [shape: f32[1,128], index: 4, kind: input, shape index: {}]   ;;  %s1461_s5 = inlined_call_operand.vmem [shape: s32[16,1], index: 5, kind: input, shape index: {}]   ;;  %s1462_s6 = inlined_call_operand.vmem [shape: f32[16,1], index: 6, kind: input, shape index: {}]   ;;  %s1463_s7 = inlined_call_operand.hbm [shape: f32[16,128], index: 7, kind: output, shape index: {0}]   ;;  %s1464_s8 = inlined_call_operand.hbm [shape: f32[16,128], index: 8, kind: output, shape index: {1}]   ;;  %s1465_s9 = inlined_call_operand.vmem [shape: f32[16,128], index: 9, kind: output, shape index: {2}]  }
   0x1   :  { %1467 = sst [smem:[#allocation8_spill]] %s1456_s0 }
   0x2   :  { %1468 = sst [smem:[#allocation9_spill]] %s1457_s1 }
   0x3   :  { %1469 = sst [smem:[#allocation10_spill]] %s1458_s2 }
   0x4   :  { %1470 = sst [smem:[#allocation11_spill]] %s1459_s3 }
   0x5   :  { %15 = vsyncpa [#allocation3], 0 }
   0x6   :  { %17 = vsyncpa [#allocation3 + $0x1], 0 }
   0x7   :  { %18 = vsyncpa [#allocation5], 0 }
   0x8   :  { %20 = vsyncpa [#allocation5 + $0x1], 0  ;;  %s1174_s30 = smov 0   ;;  %s1176_s10 = smov 0  }
   0x9   :  { %s1178_s11 = smov 0   ;;  %s1180_s12 = smov 0  }
   0xa LB: > { %s1195_s13 = sadd.s32 4294967295, %s1116_s12   ;;  %s795_s14 = sadd.s32 4294967294, %s1116_s12   ;;  %s1116_s12 = sphi %s1180_s12, %s1481_s12   ;;  %s1112_s11 = sphi %s1178_s11, %s1480_s11   ;;  %s1108_s10 = sphi %s1176_s10, %s1479_s10   ;;  %s1104_s30 = sphi %s1174_s30, %s1478_s30  }
   0xb   : > { %s1199_s15 = sadd.s32 1, %s1116_s12   ;;  %s195_s16 = sadd.s32 1, %s1112_s11 }
   0xc   : > { %s192_s17 = ssub.s32 %s1116_s12, %s1199_s15  ;;  %p205_p0 = scmp.ne.s32.totalorder %s1112_s11, %s1108_s10 }
   0xd   : > { %p193_p1 = scmp.eq.s32.totalorder %s192_s17, 0  ;;  %p206_p2 = scmp.eq.s32.totalorder %s1195_s13, 1 }
   0xe   : > { %p211_p3 = scmp.ne.s32.totalorder %s1108_s10, %s1104_s30  ;;  %p212_p4 = scmp.eq.s32.totalorder %s795_s14, 1 }
   0xf   : > { %s1210_s18 = scalar_select %p193_p1, %s1112_s11, %s195_s16  }
  0x10   : > { %p1212_p5 = por %p206_p2, %p205_p0  ;;  %p1216_p6 = por %p212_p4, %p211_p3 }
  0x11   : > { %p798_p7 = scmp.ge.s32.totalorder %s1116_s12, 1  ;;  %p315_p8 = scmp.lt.s32.totalorder %s1116_s12, 3 }
  0x13   : > { %p316_p9 = pnand %p798_p7, %p315_p8 }
  0x14   : > { %s1473_s1 = sld [smem:[#allocation9_spill]] (!%p316_p9)  ;;  %v1118_v3 = vmov (!%p316_p9), 0.0|0.0   ;;  %vm1119_vm0 = vmmov (!%p316_p9), 0   ;;  %v1120_v6 = vmov (!%p316_p9), 0.0   ;;  %s1474_s3 = sld [smem:[#allocation11_spill]] (!%p316_p9)  ;;  %v1121_v55 = vmov (!%p316_p9), 0  }
  0x15   : > { %319 = sbr.rel (%p316_p9) target bundleno = 939 (0x3ab), region = 48  ;;  %918 = vmatprep.subr.bf16.mxu0 (!%p316_p9), %v1118_v3  ;;  %880 = vmatprep.mubr.msk.f32.mxu0 (!%p316_p9), %vm1119_vm0, %v1120_v6  ;;  %p367_p10 = scmp.lt.s32.totalorder (!%p316_p9), %s1195_s13, 1  ;;  %v806_v56 = vld [vmem:[%s1460_s4] ss:$0 sm:$0xff] (!%p316_p9) }
  0x16   : > { %942 = vmatprep.subr.bf16.mxu1 (!%p316_p9), %v1118_v3  ;;  %915 = vmatprep.mubr.msk.f32.mxu1 (!%p316_p9), %vm1119_vm0, %v1120_v6  ;;  %s1475_s0 = sld [smem:[#allocation8_spill]] (!%p316_p9)  ;;  %s1476_s2 = sld [smem:[#allocation10_spill]] (!%p316_p9) }
  0x17   : > { %1014 = vset.pattern.permute.xlu0 (!%p316_p9), %v1121_v55  ;;  %1015 = vset.pattern.permute.xlu1 (!%p316_p9), %v1121_v55  ;;  %s1348_s22 = sand.u32 (!%p316_p9), 1, %s1108_s10   ;;  %s1466_s25 = sshll.u32 (!%p316_p9), %s1195_s13, 7 }
  0x18   : > { %s799_s23 = sshll.u32 (!%p316_p9), %s1348_s22, 3  ;;  %s1387_s29 = scalar_lea.hbm (!%p316_p9), %s1463_s7, %s1466_s25 }
  0x19   : > { %s1377_s24 = scalar_lea.vmem (!%p316_p9), [#allocation4], %s799_s23  ;;  %s618_s16 = scalar_lea.sflag (!%p316_p9), [#allocation3], %s1348_s22 }
  0x1a   : > { %v384_v0 = vld [vmem:[%s1473_s1] sm:$0xff] (!%p316_p9)  ;;  %v385_v1 = vld [vmem:[%s1473_s1 + $0x8] sm:$0xff] (!%p316_p9)  ;;  %v386_v2 = vld [vmem:[%s1473_s1 + $0x10] sm:$0xff] (!%p316_p9) }
  0x1b   : > { %v919_v4 = vpack.c.bf16 (!%p316_p9), %v385_v1, %v384_v0  ;;  %v387_v5 = vld [vmem:[%s1473_s1 + $0x18] sm:$0xff] (!%p316_p9)  ;;  %v388_v8 = vld [vmem:[%s1473_s1 + $0x20] sm:$0xff] (!%p316_p9)  ;;  %v389_v9 = vld [vmem:[%s1473_s1 + $0x28] sm:$0xff] (!%p316_p9)  ;;  %v585_v0 = vlaneseq (!%p316_p9) }
  0x1c   : > { %v922_v7 = vpack.c.bf16 %v387_v5, %v386_v2  ;;  %v477_v10 = vld [vmem:[%s1474_s3] sm:$0xff]  ;;  %v478_v11 = vld [vmem:[%s1474_s3 + $0x8] sm:$0xff]  ;;  %v479_v13 = vld [vmem:[%s1474_s3 + $0x10] sm:$0xff]  ;;  %v925_v15 = vpack.c.bf16 %v389_v9, %v388_v8  ;;  %s368_s21 = scalar_select %p367_p10, %s1195_s13, 1 }
  0x1d   : > { %920 = vmatpush3.bf16.msra.mxu0 %v919_v4  ;;  %v943_v12 = vpack.c.bf16 %v478_v11, %v477_v10  ;;  %v480_v14 = vld [vmem:[%s1474_s3 + $0x18] sm:$0xff]  ;;  %v390_v16 = vld [vmem:[%s1473_s1 + $0x30] sm:$0xff]  ;;  %v481_v19 = vld [vmem:[%s1474_s3 + $0x20] sm:$0xff]  ;;  %v1363_v1 = vand.u32 127, %v585_v0 }
  0x1e   : > { %921 = vmatprep.subr.bf16.mxu0 %v1118_v3  ;;  %v391_v17 = vld [vmem:[%s1473_s1 + $0x38] sm:$0xff]  ;;  %v946_v18 = vpack.c.bf16 %v480_v14, %v479_v13  ;;  %v482_v20 = vld [vmem:[%s1474_s3 + $0x28] sm:$0xff]  ;;  %v392_v22 = vld [vmem:[%s1473_s1 + $0x40] sm:$0xff]  ;;  %s1322_s14 = sshll.u32 %s368_s21, 3 }
  0x1f   : > { %944 = vmatpush3.bf16.msra.mxu1 %v943_v12  ;;  %v928_v21 = vpack.c.bf16 %v391_v17, %v390_v16  ;;  %v393_v23 = vld [vmem:[%s1473_s1 + $0x48] sm:$0xff]  ;;  %v949_v24 = vpack.c.bf16 %v482_v20, %v481_v19  ;;  %v483_v25 = vld [vmem:[%s1474_s3 + $0x30] sm:$0xff]  ;;  %v484_v26 = vld [vmem:[%s1474_s3 + $0x38] sm:$0xff]  ;;  %s370_s21 = scalar_lea.vmem %s1475_s0, %s1322_s14  ;;  %s374_s28 = scalar_lea.vmem %s1461_s5, %s1322_s14  ;;  %vm605_vm2 = vcmp.eq.s32.totalorder %v1363_v1, 1  ;;  %vm603_vm3 = vcmp.eq.s32.totalorder %v1363_v1, 0 }
  0x20   : > { %945 = vmatprep.subr.bf16.mxu1 %v1118_v3  ;;  %v931_v27 = vpack.c.bf16 %v393_v23, %v392_v22  ;;  %v394_v28 = vld [vmem:[%s1473_s1 + $0x50] sm:$0xff]  ;;  %v395_v29 = vld [vmem:[%s1473_s1 + $0x58] sm:$0xff]  ;;  %v952_v30 = vpack.c.bf16 %v484_v26, %v483_v25  ;;  %v485_v31 = vld [vmem:[%s1474_s3 + $0x40] sm:$0xff]  ;;  %s378_s17 = scalar_lea.vmem %s1462_s6, %s1322_s14 }
  0x21   : > { %923 = vmatpush3.bf16.msra.mxu0 %v922_v7  ;;  %v486_v32 = vld [vmem:[%s1474_s3 + $0x48] sm:$0xff]  ;;  %v934_v33 = vpack.c.bf16 %v395_v29, %v394_v28  ;;  %v396_v34 = vld [vmem:[%s1473_s1 + $0x60] sm:$0xff]  ;;  %v487_v37 = vld [vmem:[%s1474_s3 + $0x50] sm:$0xff] }
  0x22   : > { %924 = vmatprep.subr.bf16.mxu0 %v1118_v3  ;;  %v397_v35 = vld [vmem:[%s1473_s1 + $0x68] sm:$0xff]  ;;  %v955_v36 = vpack.c.bf16 %v486_v32, %v485_v31  ;;  %v488_v38 = vld [vmem:[%s1474_s3 + $0x58] sm:$0xff]  ;;  %v398_v40 = vld [vmem:[%s1473_s1 + $0x70] sm:$0xff] }
  0x23   : > { %947 = vmatpush3.bf16.msra.mxu1 %v946_v18  ;;  %v937_v39 = vpack.c.bf16 %v397_v35, %v396_v34  ;;  %v399_v41 = vld [vmem:[%s1473_s1 + $0x78] sm:$0xff]  ;;  %v958_v42 = vpack.c.bf16 %v488_v38, %v487_v37  ;;  %v489_v43 = vld [vmem:[%s1474_s3 + $0x60] sm:$0xff]  ;;  %v490_v44 = vld [vmem:[%s1474_s3 + $0x68] sm:$0xff] }
  0x24   : > { %948 = vmatprep.subr.bf16.mxu1 %v1118_v3  ;;  %v940_v45 = vpack.c.bf16 %v399_v41, %v398_v40  ;;  %v961_v46 = vpack.c.bf16 %v490_v44, %v489_v43  ;;  %v383_v47 = vld [vmem:[%s370_s21] sm:$0xff]  ;;  %v491_v48 = vld [vmem:[%s1474_s3 + $0x70] sm:$0xff]  ;;  %v492_v49 = vld [vmem:[%s1474_s3 + $0x78] sm:$0xff]  ;;  %s1356_s21 = scalar_lea.vmem [#allocation2], %s799_s23  ;;  %s1122_s23 = smov [#allocation2]  }
  0x25   : > { %926 = vmatpush3.bf16.msra.mxu0 %v925_v15  ;;  %v964_v50 = vpack.c.bf16 %v492_v49, %v491_v48  ;;  %v805_v51 = vld [vmem:[%s1476_s2] ss:$0 sm:$0xff]  ;;  %s640_s26 = sshll.u32 %s1356_s21, 4  ;;  %s641_s26 = int_to_ptr.vmem [resolvable:$true] %s640_s26 }
  0x26   : > { %927 = vmatprep.subr.bf16.mxu0 %v1118_v3  ;;  %v587_v60 = vld [vmem:[%s374_s28] sm:$0xff]  ;;  %s1022_s0 = scalar_lea.vmem %s641_s26, 128 }
  0x27   : > { %950 = vmatpush3.bf16.msra.mxu1 %v949_v24  ;;  %v598_v18 = vld [vmem:[%s378_s17] sm:$0xff]  ;;  %p1023_p11 = scmp.ne.s32.totalorder %s641_s26, %s1022_s0  ;;  %s1026_s17 = sshll.u32 %s1122_s23, 4  ;;  %s1027_s17 = int_to_ptr.vmem [resolvable:$false] %s1026_s17 }
  0x28   : > { %951 = vmatprep.subr.bf16.mxu1 %v1118_v3  ;;  %s1028_s1 = scalar_lea.vmem %s1027_s17, 256  ;;  %p1029_p0 = scmp.lt.s32.totalorder %s641_s26, %s1027_s17 }
  0x29   : > { %929 = vmatpush3.bf16.msra.mxu0 %v928_v21  ;;  %p1024_p12 = pnand %p1023_p11, %p1212_p5  ;;  %p1030_p1 = scmp.lt.s32.totalorder %s1028_s1, %s1022_s0 }
  0x2a   : > { %930 = vmatprep.subr.bf16.mxu0 %v1118_v3 }
  0x2b   : > { %953 = vmatpush3.bf16.msra.mxu1 %v952_v30  ;;  %p1025_p13 = pneg %p1024_p12  ;;  %p1031_p2 = por %p1030_p1, %p1029_p0 }
  0x2c   : > { %954 = vmatprep.subr.bf16.mxu1 %v1118_v3 }
  0x2d   : > { %932 = vmatpush3.bf16.msra.mxu0 %v931_v27  ;;  %p1032_p3 = pnand %p1031_p2, %p1025_p13 }
  0x2e   : > { %933 = vmatprep.subr.bf16.mxu0 %v1118_v3 }
  0x2f   : > { %956 = vmatpush3.bf16.msra.mxu1 %v955_v36 }
  0x30   : > { %957 = vmatprep.subr.bf16.mxu1 %v1118_v3 }
  0x31   : > { %935 = vmatpush3.bf16.msra.mxu0 %v934_v33 }
  0x32   : > { %936 = vmatprep.subr.bf16.mxu0 %v1118_v3 }
  0x33   : > { %959 = vmatpush3.bf16.msra.mxu1 %v958_v42 }
  0x34   : > { %960 = vmatprep.subr.bf16.mxu1 %v1118_v3 }
  0x35   : > { %938 = vmatpush3.bf16.msra.mxu0 %v937_v39 }
  0x36   : > { %939 = vmatprep.subr.bf16.mxu0 %v1118_v3 }
  0x37   : > { %962 = vmatpush3.bf16.msra.mxu1 %v961_v46 }
  0x38   : > { %963 = vmatprep.subr.bf16.mxu1 %v1118_v3 }
  0x39   : > { %941 = vmatpush3.bf16.msra.mxu0 %v940_v45 }
  0x3b   : > { %965 = vmatpush3.bf16.msra.mxu1 %v964_v50 }
  0x3c   : > { %881 = vmatmul.mubr.f32.vlgmr.msra.gmra.mrb[0].mxu0 %v383_v47 }
 0x10f   : > { %v473_v52 = vpop.f32.mrb[0].mxu0 }
 0x110   : > { %v474_v53 = vadd.f32 %v805_v51, %v473_v52  ;;  %v882_v54 = vpop.f32.mrb[1].mxu0 }
 0x112   : > { %916 = vmatmul.mubr.f32.vlgmr.msra.gmra.mrb[0].mxu1 %v474_v53 }
 0x1e5   : > { %v566_v57 = vpop.f32.mrb[0].mxu1 }
 0x1e6   : > { %v567_v58 = vadd.f32 %v806_v56, %v566_v57  ;;  %v917_v59 = vpop.f32.mrb[1].mxu1 }
 0x1e8   : > { %571 = vmax.xlane.f32.xlu0 %v567_v58  ;;  %570 = vst [vmem:[%s1356_s21] sm:$0xff] %v567_v58 }
 0x1fe   : > { %589 = vperm.xlu0 %1014, %v587_v60  }
 0x275   : > { %v572_v61 = vpop.xlane.xlu0 %571 }
 0x276   : > { %v573_v62 = vsub.f32 %v567_v58, %v572_v61 }
 0x278   : > { %v574_v63 = vmul.f32 1.442695, %v573_v62 }
 0x27a   : > { %1016 = vpow2.f32 %v574_v63 }
 0x27d   : > { %v590_v2 = vpop.permute.xlu0 %589 }
 0x27e   : > { %vm591_vm1 = vcmp.eq.s32.totalorder %v1363_v1, %v590_v2 }
 0x27f   : > { %v807_v4 = vsel %vm591_vm1, 1.0, %v1120_v6 }
 0x280   : > { %v594_v5 = vmul.f32 %v807_v4, %v567_v58 }
 0x284   : > { %v1017_v3 = vpop.eup %1016 }
 0x285   : > { %576 = vadd.xlane.f32.xlu1 %v1017_v3 }
 0x289   : > { %595 = vadd.xlane.f32.xlu1 %v594_v5 }
 0x28d   : > { %600 = vmax.index.xlane.f32.xlu1 %v567_v58 }
 0x312   : > { %v577_v7 = vpop.xlane.xlu1 %576 }
 0x313   : > { %1018 = vrcp.f32 %v577_v7 }
 0x314   : > { %1020 = vlog2.f32 %v577_v7 }
 0x316   : > { %v596_v8 = vpop.xlane.xlu1 %595 }
 0x31a   : > { %v601_v9 = vpop.xlane.xlu1 %600 }
 0x31b   : > { %v602_v10 = vcvt.s32.f32 %v601_v9 }
 0x31d   : > { %v1019_v11 = vpop.eup %1018  ;;  %v606_v6 = vsel %vm605_vm2, %v602_v10, 0.0 }
 0x31e   : > { %v1021_v12 = vpop.eup %1020  ;;  %v604_v13 = vsel %vm603_vm3, %v1019_v11, 0.0  ;;  %v580_v14 = vmul.f32 %v1019_v11, %v1017_v3 }
 0x31f   : > { %v583_v15 = vmul.f32 0.6931472, %v1021_v12  ;;  %v1373_v16 = vadd.f32 %v606_v6, %v604_v13 }
 0x320   : > { %581 = vst [vmem:[%s1377_s24] sm:$0xff] %v580_v14 }
 0x321   : > { %v584_v17 = vadd.f32 %v583_v15, %v572_v61 }
 0x323   : > { %v597_v19 = vsub.f32 %v584_v17, %v596_v8 }
 0x325   : > { %v599_v20 = vmul.f32 %v598_v18, %v597_v19 }
 0x327   : > { %611 = vperm.xlu1 %1015, %v599_v20  }
 0x328   : > { %1035 = shalt.err (!%p1032_p3)
}
 0x329   : > { %s1036_s21 = scalar_lea.hbm %s1387_s29, 128  ;;  %s1040_s23 = scalar_lea.hbm %s1463_s7, 256 }
 0x32a   : > { %p1037_p4 = scmp.ne.s32.totalorder %s1387_s29, %s1036_s21  ;;  %p1041_p9 = scmp.lt.u32.totalorder %s1387_s29, %s1463_s7 }
 0x32b   : > { %p1042_p10 = scmp.lt.u32.totalorder %s1040_s23, %s1036_s21  ;;  %p1044_p12 = scmp.lt.u32.totalorder %s1036_s21, %s1387_s29 }
 0x32c   : > { %p1038_p7 = pnand %p1037_p4, %p1212_p5 }
 0x32d   : > { %p1043_p11 = por %p1042_p10, %p1041_p9 }
 0x32e   : > { %p1039_p8 = pneg %p1038_p7 }
 0x32f   : > { %p1045_p13 = por %p1044_p12, %p1043_p11 }
 0x331   : > { %p1046_p0 = pnand %p1045_p13, %p1039_p8 }
 0x333   : > { %1049 = shalt.err (!%p1046_p0)
}
 0x334   : > { %966 = dma.vmem_to_hbm [thread:$0]  (%p1212_p5), %s641_s26, 128, %s1387_s29, %s618_s16  }
 0x335   : > { %s1477_s0 = sshll.u32 %s1195_s13, 7  ;;  %s653_s28 = sshll.u32 %s1377_s24, 4  ;;  %s654_s28 = int_to_ptr.vmem [resolvable:$true] %s653_s28 }
 0x336   : > { %s1412_s25 = scalar_lea.hbm %s1464_s8, %s1477_s0  ;;  %s623_s21 = scalar_lea.sflag [#allocation5], %s1348_s22 }
 0x337   : > { %s1050_s23 = scalar_lea.vmem %s654_s28, 128  ;;  %s1123_s17 = smov [#allocation4]  }
 0x338   : > { %p1051_p1 = scmp.ne.s32.totalorder %s654_s28, %s1050_s23  ;;  %s1054_s2 = sshll.u32 %s1123_s17, 4  ;;  %s1055_s2 = int_to_ptr.vmem [resolvable:$false] %s1054_s2 }
 0x339   : > { %s1056_s3 = scalar_lea.vmem %s1055_s2, 256  ;;  %p1057_p4 = scmp.lt.s32.totalorder %s654_s28, %s1055_s2 }
 0x33a   : > { %p1052_p2 = pnand %p1051_p1, %p1212_p5  ;;  %p1058_p7 = scmp.lt.s32.totalorder %s1056_s3, %s1050_s23 }
 0x33c   : > { %p1053_p3 = pneg %p1052_p2  ;;  %p1059_p8 = por %p1058_p7, %p1057_p4 }
 0x33e   : > { %p1060_p9 = pnand %p1059_p8, %p1053_p3 }
 0x340   : > { %1063 = shalt.err (!%p1060_p9)
}
 0x341   : > { %s1064_s13 = scalar_lea.hbm %s1412_s25, 128  ;;  %s1068_s26 = scalar_lea.hbm %s1464_s8, 256 }
 0x342   : > { %p1065_p10 = scmp.ne.s32.totalorder %s1412_s25, %s1064_s13  ;;  %p1069_p13 = scmp.lt.u32.totalorder %s1412_s25, %s1464_s8 }
 0x343   : > { %p1070_p0 = scmp.lt.u32.totalorder %s1068_s26, %s1064_s13  ;;  %p1072_p2 = scmp.lt.u32.totalorder %s1064_s13, %s1412_s25 }
 0x344   : > { %p1066_p11 = pnand %p1065_p10, %p1212_p5 }
 0x345   : > { %p1071_p1 = por %p1070_p0, %p1069_p13 }
 0x346   : > { %p1067_p12 = pneg %p1066_p11 }
 0x347   : > { %p1073_p3 = por %p1072_p2, %p1071_p1 }
 0x349   : > { %p1074_p4 = pnand %p1073_p3, %p1067_p12 }
 0x34b   : > { %1077 = shalt.err (!%p1074_p4)
}
 0x34c   : > { %967 = dma.vmem_to_hbm [thread:$0]  (%p1212_p5), %s654_s28, 128, %s1412_s25, %s623_s21   ;;  %vm608_vm4 = vcmp.eq.s32.totalorder %v1363_v1, 2 }
 0x34d   : > { %s382_s0 = scalar_lea.vmem %s1465_s9, %s1322_s14 }
 0x3a6   : > { %v612_v21 = vpop.permute.xlu1 %611 }
 0x3a7   : > { %v614_v22 = vsel %vm608_vm4, %v612_v21, 0.0 }
 0x3a8   : > { %v615_v23 = vadd.f32 %v614_v22, %v1373_v16 }
 0x3aa   : > { %616 = vst [vmem:[%s382_s0] sm:$0xff] %v615_v23 }
 0x3ab PF: > { %p977_p7 = scmp.ge.s32.totalorder %s1116_s12, 2  ;;  %s668_s19 = sand.u32 1, %s1104_s30  }
 0x3ac   : > { %s669_s1 = scalar_lea.sflag [#allocation3], %s668_s19 }
 0x3ad   : > { %p971_p8 = pnand %p977_p7, %p1216_p6 }
 0x3af   : > { %1095 = dma.done.wait (!%p971_p8), %s669_s1, 128  }
 0x3b0   : > { %1097 = vsyncadd (!%p971_p8), %s669_s1, 4294967168  ;;  %s678_s27 = scalar_lea.sflag [#allocation5], %s668_s19 }
 0x3b1   : > { %1099 = dma.done.wait (!%p971_p8), %s678_s27, 128  }
 0x3b2   : > { %1101 = vsyncadd (!%p971_p8), %s678_s27, 4294967168  ;;  %p23_p5 = scmp.ge.s32.totalorder %s1199_s15, 4   ;;  %s1478_s30 = smov %s1108_s10 }
 0x3b3   : > { %s1479_s10 = smov %s1112_s11  ;;  %s1480_s11 = smov %s1210_s18 }
 0x3b4   : > { %s1481_s12 = smov %s1199_s15  ;;  %25 = sbr.rel (!%p23_p5) target bundleno = 10 (0xa), region = 118 }
 0x3bb   :  { %690 = vsyncpa [#allocation3], 1 }
 0x3bc   :  { %692 = vsyncpa [#allocation3 + $0x1], 1 }
 0x3bd   :  { %693 = vsyncpa [#allocation5], 1 }
 0x3be   :  { %695 = vsyncpa [#allocation5 + $0x1], 1 }

</bundles_post_ra>
